<compile_context>
chip_gen: v7x
topology: tpu7x:2x2x1
jax: 0.10.0
libtpu: 0.0.40
codegen_flags: <defaults>
</compile_context>

<pallas_src>
import jax
import jax.numpy as jnp
from jax.experimental import pallas as pl
from jax.experimental.pallas import tpu as pltpu

TAU = 0.07
INV_TAU = 1.0 / TAU
ALPHA = 0.5                 # total_loss = alpha*info_nce + (1-alpha)*occ
W1 = 0.5                    # fixed, requires_grad=False parameters
W2 = 0.5
EPS_NORM = 1e-12            # F.normalize eps
EPS_NORM_SQ = EPS_NORM * EPS_NORM
NEG_BIG = -1e30             # finite "minus infinity" for masking
LANE = 128


def _round_up(x, m):
    return ((x + m - 1) // m) * m


def _make_kernel(batch, tq, nk):
    """batch = real (unpadded) batch size, tq = tile rows, nk = #key tiles."""

    def kernel(xg_ref, xbk_ref, xbq_ref, wg_ref, wb_ref, c_ref, out_ref,
               x1_ref, m_ref, l_ref, base_ref):
        qi = pl.program_id(0)   # query-tile index ("parallel")
        ki = pl.program_id(1)   # key-tile index   ("arbitrary" / reduction)

        # ---- per-query-tile init: projections, normalize, diag, OCC ----
        @pl.when(ki == 0)
        def _init():
            h1 = jnp.dot(xg_ref[...], wg_ref[...],
                         preferred_element_type=jnp.float32)
            h2 = jnp.dot(xbq_ref[...], wb_ref[...],
                         preferred_element_type=jnp.float32)
            # F.normalize: x / max(||x||, eps) == x * rsqrt(max(||x||^2, eps^2))
            x1 = h1 * jax.lax.rsqrt(
                jnp.maximum(jnp.sum(h1 * h1, axis=1, keepdims=True), EPS_NORM_SQ))
            x2q = h2 * jax.lax.rsqrt(
                jnp.maximum(jnp.sum(h2 * h2, axis=1, keepdims=True), EPS_NORM_SQ))
            x1_ref[...] = x1

            c = c_ref[...]                                # (1, D_pad)
            c_sq = jnp.sum(c * c)

            # diag(sim) as a row-wise dot (no (B,B) iota / where)
            diag = jnp.sum(x1 * x2q, axis=1, keepdims=True) * INV_TAU  # (tq,1)

            # OCC with ||x||=1: sum_i||x_i - c||^2 = cnt*(1+|c|^2) - 2*(sum x)·c
            # Padded (all-zero) rows drop out of the column sums automatically.
            cnt = jnp.minimum(batch - qi * tq, tq).astype(jnp.float32)
            s1 = jnp.sum(x1, axis=0, keepdims=True)       # (1, D_pad)
            s2 = jnp.sum(x2q, axis=0, keepdims=True)
            occ1 = cnt * (1.0 + c_sq) - 2.0 * jnp.sum(s1 * c)
            occ2 = cnt * (1.0 + c_sq) - 2.0 * jnp.sum(s2 * c)
            occ_tile = (1.0 - ALPHA) * (W1 * occ1 + W2 * occ2)  # scalar

            # per-row constant part of the loss; the tile-level OCC scalar is
            # folded into row 0 (row 0 of every existing q-tile is valid).
            row = jax.lax.broadcasted_iota(jnp.int32, (tq, 1), 0)
            base_ref[...] = -ALPHA * diag + jnp.where(row == 0, occ_tile, 0.0)

            m_ref[...] = jnp.full_like(m_ref, NEG_BIG)
            l_ref[...] = jnp.zeros_like(l_ref)

        # ---- key-side projection + normalize for this key tile ----
        h2k = jnp.dot(xbk_ref[...], wb_ref[...],
                      preferred_element_type=jnp.float32)
        x2k = h2k * jax.lax.rsqrt(
            jnp.maximum(jnp.sum(h2k * h2k, axis=1, keepdims=True), EPS_NORM_SQ))

        # sim tile via NT contraction (no explicit transpose of x2)
        s = jax.lax.dot_general(
            x1_ref[...], x2k,
            dimension_numbers=(((1,), (1,)), ((), ())),
            preferred_element_type=jnp.float32) * INV_TAU           # (tq, tq)

        # mask padded key columns
        col = jax.lax.broadcasted_iota(jnp.int32, s.shape, 1)
        s = jnp.where(ki * tq + col < batch, s, NEG_BIG)

        # ---- online log-sum-exp update ----
        m_prev = m_ref[...]
        m_new = jnp.maximum(m_prev, jnp.max(s, axis=1, keepdims=True))
        l_ref[...] = (l_ref[...] * jnp.exp(m_prev - m_new)
                      + jnp.sum(jnp.exp(s - m_new), axis=1, keepdims=True))
        m_ref[...] = m_new

        # ---- finalize this query tile ----
        @pl.when(ki == nk - 1)
        def _finalize():
            lse = m_ref[...] + jnp.log(l_ref[...])
            per_row = ALPHA * lse + base_ref[...]
            row = jax.lax.broadcasted_iota(jnp.int32, per_row.shape, 0)
            per_row = jnp.where(qi * tq + row < batch, per_row, 0.0) * (1.0 / batch)
            # lane-dense output tile; host sums column 0.
            out_ref[...] = jnp.broadcast_to(per_row, out_ref.shape)

    return kernel


def merge_loss(pooled_gin, pooled_bert, w_gin, w_bert, center):
    """Fused encoder heads + normalize + InfoNCE + OCC, returns scalar loss."""
    B, fg = pooled_gin.shape
    fe = pooled_bert.shape[1]
    d = w_gin.shape[1]

    fg_p = _round_up(fg, LANE)
    fe_p = _round_up(fe, LANE)
    d_p = _round_up(d, LANE)

    # batch tiling (bf16 sublane packing -> multiples of 16)
    if B <= 128:
        tq = _round_up(B, 16)
        b_p = tq
    else:
        tq = 128
        b_p = _round_up(B, tq)
    nq = b_p // tq
    nk = b_p // tq

    def pad2(x, rows, cols):
        return jnp.pad(x, ((0, rows - x.shape[0]), (0, cols - x.shape[1])))

    xg = pad2(pooled_gin, b_p, fg_p).astype(jnp.bfloat16)
    xb = pad2(pooled_bert, b_p, fe_p).astype(jnp.bfloat16)
    wg = pad2(w_gin, fg_p, d_p).astype(jnp.bfloat16)
    wb = pad2(w_bert, fe_p, d_p).astype(jnp.bfloat16)
    cc = pad2(center, 1, d_p).astype(jnp.float32)

    kernel = _make_kernel(B, tq, nk)

    flops = int(2 * b_p * d_p * (fg_p + fe_p)      # query-side projections
                + 2 * b_p * nq * fe_p * d_p        # key-side projections
                + 2 * b_p * b_p * d_p)             # sim matmul
    cost = pl.CostEstimate(
        flops=flops,
        transcendentals=int(b_p * b_p + 4 * b_p),
        bytes_accessed=int(2 * (xg.size + 2 * xb.size + wg.size + wb.size)
                           + 4 * cc.size + 4 * b_p * LANE))

    grid_spec = pltpu.PrefetchScalarGridSpec(
        num_scalar_prefetch=0,
        grid=(nq, nk),
        in_specs=[
            pl.BlockSpec((tq, fg_p), lambda qi, ki: (qi, 0)),   # xg   (query)
            pl.BlockSpec((tq, fe_p), lambda qi, ki: (ki, 0)),   # xb   (keys)
            pl.BlockSpec((tq, fe_p), lambda qi, ki: (qi, 0)),   # xb   (diag/OCC)
            pl.BlockSpec((fg_p, d_p), lambda qi, ki: (0, 0)),   # w_gin  (resident)
            pl.BlockSpec((fe_p, d_p), lambda qi, ki: (0, 0)),   # w_bert (resident)
            pl.BlockSpec((1, d_p), lambda qi, ki: (0, 0)),      # center (resident)
        ],
        out_specs=pl.BlockSpec((tq, LANE), lambda qi, ki: (qi, 0)),
        scratch_shapes=[
            pltpu.VMEM((tq, d_p), jnp.float32),   # normalized x1 tile
            pltpu.VMEM((tq, 1), jnp.float32),     # online max  m
            pltpu.VMEM((tq, 1), jnp.float32),     # online sum  l
            pltpu.VMEM((tq, 1), jnp.float32),     # -alpha*diag + occ(row0)
        ],
    )

    out = pl.pallas_call(
        kernel,
        out_shape=jax.ShapeDtypeStruct((b_p, LANE), jnp.float32),
        grid_spec=grid_spec,
        compiler_params=pltpu.CompilerParams(
            dimension_semantics=("parallel", "arbitrary")),
        cost_estimate=cost,
    )(xg, xb, xb, wg, wb, cc)

    return jnp.sum(out[:, 0])


@jax.jit
def _forward(params, node_feats, input_ids, attention_mask):
    # TODO(synk): OCGIN message passing and the BERT transformer stack are
    # external submodules not given in the reference; stand-ins are simple
    # pooling encoders (fused by XLA under this jit) whose projection matmuls
    # run inside the Pallas kernel.
    pooled_gin = jnp.sum(node_feats, axis=1)                        # (B, Fg)
    emb = jnp.take(params["emb_table"], input_ids, axis=0)          # (B, S, E)
    m = attention_mask[..., None].astype(jnp.float32)
    pooled_bert = jnp.sum(emb * m, axis=1) / jnp.maximum(jnp.sum(m, axis=1), 1.0)
    return merge_loss(pooled_gin, pooled_bert, params["w_gin"],
                      params["w_bert"], params["center"])


class MergeModelPallas:
    """JAX/Pallas re-implementation of MergeModel's forward -> total_loss."""

    def __init__(self, dim_features, config1, config2, key):
        D = config1["hidden_dim"] * config1["num_layers"]
        emb_dim = config2["emb_dim"]
        vocab = config2["vocab_size"]
        k1, k2, k3, k4 = jax.random.split(key, 4)
        self.params = {
            "w_gin": jax.random.normal(k1, (dim_features, D), jnp.float32)
                     * (1.0 / jnp.sqrt(dim_features)),
            "w_bert": jax.random.normal(k2, (emb_dim, D), jnp.float32)
                      * (1.0 / jnp.sqrt(emb_dim)),
            "emb_table": jax.random.normal(k3, (vocab, emb_dim), jnp.float32) * 0.02,
            # nn.init.normal_(center, mean=0, std=0.1)
            "center": jax.random.normal(k4, (1, D), jnp.float32) * 0.1,
        }
        # w1 = w2 = 0.5 fixed (requires_grad=False) -> baked into the kernel.
        # NOTE: the reference forward also computes cosine-similarity "rewards"
        # and re-derived weights via .item()/softmax, but those never reach the
        # returned total_loss; that dead code is intentionally not reproduced.

    def __call__(self, node_feats, input_ids, attention_mask):
        return _forward(self.params, node_feats, input_ids, attention_mask)


def _reference_loss(pooled_gin, pooled_bert, w_gin, w_bert, center):
    """Pure-JAX reference of the same math (bf16-quantized projections)."""
    q = lambda a: a.astype(jnp.bfloat16).astype(jnp.float32)
    h1 = jnp.dot(q(pooled_gin), q(w_gin), precision="highest")
    h2 = jnp.dot(q(pooled_bert), q(w_bert), precision="highest")
    x1 = h1 / jnp.maximum(jnp.linalg.norm(h1, axis=1, keepdims=True), EPS_NORM)
    x2 = h2 / jnp.maximum(jnp.linalg.norm(h2, axis=1, keepdims=True), EPS_NORM)
    sim = jnp.dot(x1, x2.T, precision="highest") / TAU
    lse = jax.scipy.special.logsumexp(sim, axis=1)
    info_nce = jnp.mean(lse - jnp.diag(sim))
    occ1 = jnp.mean(jnp.sum((x1 - center) ** 2, axis=1))
    occ2 = jnp.mean(jnp.sum((x2 - center) ** 2, axis=1))
    return ALPHA * info_nce + (1.0 - ALPHA) * (W1 * occ1 + W2 * occ2)


if __name__ == "__main__":
    # Small shapes consistent with the module.
    B, N_NODES, DIM_FEATURES, SEQ = 8, 10, 16, 8
    config1 = {"hidden_dim": 8, "num_layers": 4}        # D = 32
    config2 = {"vocab_size": 50, "emb_dim": 32}

    key = jax.random.PRNGKey(0)
    k_model, k_x, k_ids = jax.random.split(key, 3)

    model = MergeModelPallas(DIM_FEATURES, config1, config2, k_model)

    node_feats = jax.random.normal(k_x, (B, N_NODES, DIM_FEATURES), jnp.float32)
    input_ids = jax.random.randint(k_ids, (B, SEQ), 0, config2["vocab_size"],
                                   dtype=jnp.int32)
    attention_mask = jnp.ones((B, SEQ), dtype=jnp.int32).at[:, SEQ // 2:].set(
        jnp.arange(SEQ // 2, dtype=jnp.int32)[None, :] % 2)

    total_loss = model(node_feats, input_ids, attention_mask)
    jax.block_until_ready(total_loss)
    assert total_loss.shape == () and bool(jnp.isfinite(total_loss))

    # Correctness check vs. a pure-JAX reference (loose tolerance covers
    # bf16/MXU f32 precision-path and summation-order differences).
    pooled_gin = jnp.sum(node_feats, axis=1)
    emb = jnp.take(model.params["emb_table"], input_ids, axis=0)
    mm = attention_mask[..., None].astype(jnp.float32)
    pooled_bert = jnp.sum(emb * mm, axis=1) / jnp.maximum(jnp.sum(mm, axis=1), 1.0)
    ref = _reference_loss(pooled_gin, pooled_bert, model.params["w_gin"],
                          model.params["w_bert"], model.params["center"])
    assert bool(jnp.allclose(total_loss, ref, rtol=5e-2, atol=5e-2)), \
        (float(total_loss), float(ref))

    print("KERNEL_OK")
</pallas_src>

<mosaic_0001>
module attributes {stable_mosaic.version = 11 : i64} {
  func.func @kernel(%arg0: i32, %arg1: i32, %arg2: memref<16x128xbf16, #tpu.memory_space<vmem>>, %arg3: memref<16x128xbf16, #tpu.memory_space<vmem>>, %arg4: memref<16x128xbf16, #tpu.memory_space<vmem>>, %arg5: memref<128x128xbf16, #tpu.memory_space<vmem>>, %arg6: memref<128x128xbf16, #tpu.memory_space<vmem>>, %arg7: memref<1x128xf32, #tpu.memory_space<vmem>>, %arg8: memref<16x128xf32, #tpu.memory_space<vmem>>, %arg9: memref<16x128xf32, #tpu.memory_space<vmem>>, %arg10: memref<16x1xf32, #tpu.memory_space<vmem>>, %arg11: memref<16x1xf32, #tpu.memory_space<vmem>>, %arg12: memref<16x1xf32, #tpu.memory_space<vmem>>) attributes {dimension_semantics = [#tpu.dimension_semantics<parallel>, #tpu.dimension_semantics<arbitrary>], iteration_bounds = array<i64: 1, 1>, scalar_prefetch = 0 : i64, scratch_operands = 4 : i64, tpu.core_type = #tpu.core_type<tc>, window_params = [{transform_indices = @transform_0, window_bounds = array<i64: 16, 128>}, {transform_indices = @transform_1, window_bounds = array<i64: 16, 128>}, {transform_indices = @transform_2, window_bounds = array<i64: 16, 128>}, {pipeline_mode = #tpu.pipeline_mode<synchronous>, transform_indices = @transform_3, window_bounds = array<i64: 128, 128>}, {pipeline_mode = #tpu.pipeline_mode<synchronous>, transform_indices = @transform_4, window_bounds = array<i64: 128, 128>}, {pipeline_mode = #tpu.pipeline_mode<synchronous>, transform_indices = @transform_5, window_bounds = array<i64: 1, 128>}, {transform_indices = @transform_6, window_bounds = array<i64: 16, 128>}]} {
    %c0_i32 = arith.constant 0 : i32
    %0 = arith.cmpi eq, %arg1, %c0_i32 : i32
    %1 = arith.extui %0 : i1 to i32
    %c0_i32_0 = arith.constant 0 : i32
    %2 = arith.cmpi ne, %1, %c0_i32_0 : i32
    scf.if %2 {
      %c0_23 = arith.constant 0 : index
      %c0_24 = arith.constant 0 : index
      %45 = vector.load %arg2[%c0_23, %c0_24] : memref<16x128xbf16, #tpu.memory_space<vmem>>, vector<16x128xbf16>
      %c0_25 = arith.constant 0 : index
      %c0_26 = arith.constant 0 : index
      %46 = vector.load %arg5[%c0_25, %c0_26] : memref<128x128xbf16, #tpu.memory_space<vmem>>, vector<128x128xbf16>
      %cst_27 = arith.constant dense<0.000000e+00> : vector<16x128xf32>
      %47 = tpu.matmul %45, %46, %cst_27 {dimension_numbers = #tpu.dot_dimension_numbers<[1], [0], [0], [1], [0, 0, 1, 1], [], []>} : vector<16x128xbf16>, vector<128x128xbf16>, vector<16x128xf32> -> vector<16x128xf32>
      %c0_28 = arith.constant 0 : index
      %c0_29 = arith.constant 0 : index
      %48 = vector.load %arg4[%c0_28, %c0_29] : memref<16x128xbf16, #tpu.memory_space<vmem>>, vector<16x128xbf16>
      %c0_30 = arith.constant 0 : index
      %c0_31 = arith.constant 0 : index
      %49 = vector.load %arg6[%c0_30, %c0_31] : memref<128x128xbf16, #tpu.memory_space<vmem>>, vector<128x128xbf16>
      %cst_32 = arith.constant dense<0.000000e+00> : vector<16x128xf32>
      %50 = tpu.matmul %48, %49, %cst_32 {dimension_numbers = #tpu.dot_dimension_numbers<[1], [0], [0], [1], [0, 0, 1, 1], [], []>} : vector<16x128xbf16>, vector<128x128xbf16>, vector<16x128xf32> -> vector<16x128xf32>
      %51 = arith.mulf %47, %47 : vector<16x128xf32>
      %cst_33 = arith.constant dense<0.000000e+00> : vector<16xf32>
      %52 = vector.multi_reduction <add>, %51, %cst_33 [1] : vector<16x128xf32> to vector<16xf32>
      %53 = vector.shape_cast %52 : vector<16xf32> to vector<16x1xf32>
      %cst_34 = arith.constant 1.000000e-24 : f32
      %54 = vector.broadcast %cst_34 : f32 to vector<16x1xf32>
      %55 = arith.maximumf %53, %54 : vector<16x1xf32>
      %56 = math.rsqrt %55 : vector<16x1xf32>
      %57 = vector.broadcast %56 : vector<16x1xf32> to vector<16x128xf32>
      %58 = arith.mulf %47, %57 : vector<16x128xf32>
      %59 = arith.mulf %50, %50 : vector<16x128xf32>
      %cst_35 = arith.constant dense<0.000000e+00> : vector<16xf32>
      %60 = vector.multi_reduction <add>, %59, %cst_35 [1] : vector<16x128xf32> to vector<16xf32>
      %61 = vector.shape_cast %60 : vector<16xf32> to vector<16x1xf32>
      %cst_36 = arith.constant 1.000000e-24 : f32
      %62 = vector.broadcast %cst_36 : f32 to vector<16x1xf32>
      %63 = arith.maximumf %61, %62 : vector<16x1xf32>
      %64 = math.rsqrt %63 : vector<16x1xf32>
      %65 = vector.broadcast %64 : vector<16x1xf32> to vector<16x128xf32>
      %66 = arith.mulf %50, %65 : vector<16x128xf32>
      %c0_37 = arith.constant 0 : index
      %c0_38 = arith.constant 0 : index
      %67 = vector.load %arg9[%c0_37, %c0_38] : memref<16x128xf32, #tpu.memory_space<vmem>>, vector<16x128xf32>
      tpu.vector_store %arg9[%c0_37, %c0_38], %58 {strides = array<i32>} : memref<16x128xf32, #tpu.memory_space<vmem>>, vector<16x128xf32>,
      %c0_39 = arith.constant 0 : index
      %c0_40 = arith.constant 0 : index
      %68 = vector.load %arg7[%c0_39, %c0_40] : memref<1x128xf32, #tpu.memory_space<vmem>>, vector<1x128xf32>
      %69 = arith.mulf %68, %68 : vector<1x128xf32>
      %70 = vector.shape_cast %69 : vector<1x128xf32> to vector<1x1x128xf32>
      %cst_41 = arith.constant dense<0.000000e+00> : vector<1xf32>
      %71 = vector.multi_reduction <add>, %70, %cst_41 [1, 2] : vector<1x1x128xf32> to vector<1xf32>
      %72 = vector.shape_cast %71 : vector<1xf32> to vector<1x1x1xf32>
      %73 = vector.extract %72[0, 0, 0] : f32 from vector<1x1x1xf32>
      %74 = arith.mulf %58, %66 : vector<16x128xf32>
      %cst_42 = arith.constant dense<0.000000e+00> : vector<16xf32>
      %75 = vector.multi_reduction <add>, %74, %cst_42 [1] : vector<16x128xf32> to vector<16xf32>
      %76 = vector.shape_cast %75 : vector<16xf32> to vector<16x1xf32>
      %cst_43 = arith.constant 14.2857141 : f32
      %77 = vector.broadcast %cst_43 : f32 to vector<16x1xf32>
      %78 = arith.mulf %76, %77 : vector<16x1xf32>
      %c16_i32_44 = arith.constant 16 : i32
      %79 = arith.muli %arg0, %c16_i32_44 : i32
      %c8_i32_45 = arith.constant 8 : i32
      %80 = arith.subi %c8_i32_45, %79 : i32
      %c16_i32_46 = arith.constant 16 : i32
      %81 = arith.minsi %80, %c16_i32_46 : i32
      %82 = arith.sitofp %81 : i32 to f32
      %cst_47 = arith.constant dense<0.000000e+00> : vector<128xf32>
      %83 = vector.multi_reduction <add>, %58, %cst_47 [0] : vector<16x128xf32> to vector<128xf32>
      %84 = vector.shape_cast %83 : vector<128xf32> to vector<1x128xf32>
      %cst_48 = arith.constant dense<0.000000e+00> : vector<128xf32>
      %85 = vector.multi_reduction <add>, %66, %cst_48 [0] : vector<16x128xf32> to vector<128xf32>
      %86 = vector.shape_cast %85 : vector<128xf32> to vector<1x128xf32>
      %cst_49 = arith.constant 1.000000e+00 : f32
      %87 = arith.addf %cst_49, %73 : f32
      %88 = arith.mulf %82, %87 : f32
      %89 = arith.mulf %84, %68 : vector<1x128xf32>
      %90 = vector.shape_cast %89 : vector<1x128xf32> to vector<1x1x128xf32>
      %cst_50 = arith.constant dense<0.000000e+00> : vector<1xf32>
      %91 = vector.multi_reduction <add>, %90, %cst_50 [1, 2] : vector<1x1x128xf32> to vector<1xf32>
      %92 = vector.shape_cast %91 : vector<1xf32> to vector<1x1x1xf32>
      %93 = vector.extract %92[0, 0, 0] : f32 from vector<1x1x1xf32>
      %cst_51 = arith.constant 2.000000e+00 : f32
      %94 = arith.mulf %cst_51, %93 : f32
      %95 = arith.subf %88, %94 : f32
      %cst_52 = arith.constant 1.000000e+00 : f32
      %96 = arith.addf %cst_52, %73 : f32
      %97 = arith.mulf %82, %96 : f32
      %98 = arith.mulf %86, %68 : vector<1x128xf32>
      %99 = vector.shape_cast %98 : vector<1x128xf32> to vector<1x1x128xf32>
      %cst_53 = arith.constant dense<0.000000e+00> : vector<1xf32>
      %100 = vector.multi_reduction <add>, %99, %cst_53 [1, 2] : vector<1x1x128xf32> to vector<1xf32>
      %101 = vector.shape_cast %100 : vector<1xf32> to vector<1x1x1xf32>
      %102 = vector.extract %101[0, 0, 0] : f32 from vector<1x1x1xf32>
      %cst_54 = arith.constant 2.000000e+00 : f32
      %103 = arith.mulf %cst_54, %102 : f32
      %104 = arith.subf %97, %103 : f32
      %cst_55 = arith.constant 5.000000e-01 : f32
      %105 = arith.mulf %cst_55, %95 : f32
      %cst_56 = arith.constant 5.000000e-01 : f32
      %106 = arith.mulf %cst_56, %104 : f32
      %107 = arith.addf %105, %106 : f32
      %cst_57 = arith.constant 5.000000e-01 : f32
      %108 = arith.mulf %cst_57, %107 : f32
      %109 = tpu.iota {dimensions = array<i32: 0>} : vector<16x1xi32>
      %cst_58 = arith.constant -5.000000e-01 : f32
      %110 = vector.broadcast %cst_58 : f32 to vector<16x1xf32>
      %111 = arith.mulf %110, %78 : vector<16x1xf32>
      %c0_i32_59 = arith.constant 0 : i32
      %112 = vector.broadcast %c0_i32_59 : i32 to vector<16x1xi32>
      %113 = arith.cmpi eq, %109, %112 : vector<16x1xi32>
      %cst_60 = arith.constant 0.000000e+00 : f32
      %114 = vector.broadcast %108 : f32 to vector<16x1xf32>
      %115 = vector.broadcast %cst_60 : f32 to vector<16x1xf32>
      %116 = arith.select %113, %114, %115 : vector<16x1xi1>, vector<16x1xf32>
      %117 = arith.addf %111, %116 : vector<16x1xf32>
      %c0_61 = arith.constant 0 : index
      %c0_62 = arith.constant 0 : index
      %118 = vector.load %arg12[%c0_61, %c0_62] : memref<16x1xf32, #tpu.memory_space<vmem>>, vector<16x1xf32>
      tpu.vector_store %arg12[%c0_61, %c0_62], %117 {strides = array<i32>} : memref<16x1xf32, #tpu.memory_space<vmem>>, vector<16x1xf32>,
      %cst_63 = arith.constant -1.000000e+30 : f32
      %119 = vector.broadcast %cst_63 : f32 to vector<16x1xf32>
      %c0_64 = arith.constant 0 : index
      %c0_65 = arith.constant 0 : index
      %120 = vector.load %arg10[%c0_64, %c0_65] : memref<16x1xf32, #tpu.memory_space<vmem>>, vector<16x1xf32>
      tpu.vector_store %arg10[%c0_64, %c0_65], %119 {strides = array<i32>} : memref<16x1xf32, #tpu.memory_space<vmem>>, vector<16x1xf32>,
      %cst_66 = arith.constant 0.000000e+00 : f32
      %121 = vector.broadcast %cst_66 : f32 to vector<16x1xf32>
      %c0_67 = arith.constant 0 : index
      %c0_68 = arith.constant 0 : index
      %122 = vector.load %arg11[%c0_67, %c0_68] : memref<16x1xf32, #tpu.memory_space<vmem>>, vector<16x1xf32>
      tpu.vector_store %arg11[%c0_67, %c0_68], %121 {strides = array<i32>} : memref<16x1xf32, #tpu.memory_space<vmem>>, vector<16x1xf32>,
    } else {
    }
    %c0 = arith.constant 0 : index
    %c0_1 = arith.constant 0 : index
    %3 = vector.load %arg3[%c0, %c0_1] : memref<16x128xbf16, #tpu.memory_space<vmem>>, vector<16x128xbf16>
    %c0_2 = arith.constant 0 : index
    %c0_3 = arith.constant 0 : index
    %4 = vector.load %arg6[%c0_2, %c0_3] : memref<128x128xbf16, #tpu.memory_space<vmem>>, vector<128x128xbf16>
    %cst = arith.constant dense<0.000000e+00> : vector<16x128xf32>
    %5 = tpu.matmul %3, %4, %cst {dimension_numbers = #tpu.dot_dimension_numbers<[1], [0], [0], [1], [0, 0, 1, 1], [], []>} : vector<16x128xbf16>, vector<128x128xbf16>, vector<16x128xf32> -> vector<16x128xf32>
    %6 = arith.mulf %5, %5 : vector<16x128xf32>
    %cst_4 = arith.constant dense<0.000000e+00> : vector<16xf32>
    %7 = vector.multi_reduction <add>, %6, %cst_4 [1] : vector<16x128xf32> to vector<16xf32>
    %8 = vector.shape_cast %7 : vector<16xf32> to vector<16x1xf32>
    %cst_5 = arith.constant 1.000000e-24 : f32
    %9 = vector.broadcast %cst_5 : f32 to vector<16x1xf32>
    %10 = arith.maximumf %8, %9 : vector<16x1xf32>
    %11 = math.rsqrt %10 : vector<16x1xf32>
    %12 = vector.broadcast %11 : vector<16x1xf32> to vector<16x128xf32>
    %13 = arith.mulf %5, %12 : vector<16x128xf32>
    %c0_6 = arith.constant 0 : index
    %c0_7 = arith.constant 0 : index
    %14 = vector.load %arg9[%c0_6, %c0_7] : memref<16x128xf32, #tpu.memory_space<vmem>>, vector<16x128xf32>
    %cst_8 = arith.constant dense<0.000000e+00> : vector<16x16xf32>
    %15 = tpu.matmul %14, %13, %cst_8 {dimension_numbers = #tpu.dot_dimension_numbers<[1], [1], [0], [0], [0, 0, 1, 0], [], []>} : vector<16x128xf32>, vector<16x128xf32>, vector<16x16xf32> -> vector<16x16xf32>
    %cst_9 = arith.constant 14.2857141 : f32
    %16 = vector.broadcast %cst_9 : f32 to vector<16x16xf32>
    %17 = arith.mulf %15, %16 : vector<16x16xf32>
    %18 = tpu.iota {dimensions = array<i32: 1>} : vector<16x16xi32>
    %c16_i32 = arith.constant 16 : i32
    %19 = arith.muli %arg1, %c16_i32 : i32
    %20 = vector.broadcast %19 : i32 to vector<16x16xi32>
    %21 = arith.addi %20, %18 : vector<16x16xi32>
    %c8_i32 = arith.constant 8 : i32
    %22 = vector.broadcast %c8_i32 : i32 to vector<16x16xi32>
    %23 = arith.cmpi slt, %21, %22 : vector<16x16xi32>
    %cst_10 = arith.constant -1.000000e+30 : f32
    %24 = vector.broadcast %cst_10 : f32 to vector<16x16xf32>
    %25 = arith.select %23, %17, %24 : vector<16x16xi1>, vector<16x16xf32>
    %c0_11 = arith.constant 0 : index
    %c0_12 = arith.constant 0 : index
    %26 = vector.load %arg10[%c0_11, %c0_12] : memref<16x1xf32, #tpu.memory_space<vmem>>, vector<16x1xf32>
    %cst_13 = arith.constant dense<0xFF800000> : vector<16xf32>
    %27 = vector.multi_reduction <maximumf>, %25, %cst_13 [1] : vector<16x16xf32> to vector<16xf32>
    %28 = vector.shape_cast %27 : vector<16xf32> to vector<16x1xf32>
    %29 = arith.maximumf %26, %28 : vector<16x1xf32>
    %c0_14 = arith.constant 0 : index
    %c0_15 = arith.constant 0 : index
    %30 = vector.load %arg11[%c0_14, %c0_15] : memref<16x1xf32, #tpu.memory_space<vmem>>, vector<16x1xf32>
    %31 = arith.subf %26, %29 : vector<16x1xf32>
    %32 = math.exp %31 : vector<16x1xf32>
    %33 = arith.mulf %30, %32 : vector<16x1xf32>
    %34 = vector.broadcast %29 : vector<16x1xf32> to vector<16x16xf32>
    %35 = arith.subf %25, %34 : vector<16x16xf32>
    %36 = math.exp %35 : vector<16x16xf32>
    %cst_16 = arith.constant dense<0.000000e+00> : vector<16xf32>
    %37 = vector.multi_reduction <add>, %36, %cst_16 [1] : vector<16x16xf32> to vector<16xf32>
    %38 = vector.shape_cast %37 : vector<16xf32> to vector<16x1xf32>
    %39 = arith.addf %33, %38 : vector<16x1xf32>
    %c0_17 = arith.constant 0 : index
    %c0_18 = arith.constant 0 : index
    %40 = vector.load %arg11[%c0_17, %c0_18] : memref<16x1xf32, #tpu.memory_space<vmem>>, vector<16x1xf32>
    tpu.vector_store %arg11[%c0_17, %c0_18], %39 {strides = array<i32>} : memref<16x1xf32, #tpu.memory_space<vmem>>, vector<16x1xf32>,
    %c0_19 = arith.constant 0 : index
    %c0_20 = arith.constant 0 : index
    %41 = vector.load %arg10[%c0_19, %c0_20] : memref<16x1xf32, #tpu.memory_space<vmem>>, vector<16x1xf32>
    tpu.vector_store %arg10[%c0_19, %c0_20], %29 {strides = array<i32>} : memref<16x1xf32, #tpu.memory_space<vmem>>, vector<16x1xf32>,
    %c0_i32_21 = arith.constant 0 : i32
    %42 = arith.cmpi eq, %arg1, %c0_i32_21 : i32
    %43 = arith.extui %42 : i1 to i32
    %c0_i32_22 = arith.constant 0 : i32
    %44 = arith.cmpi ne, %43, %c0_i32_22 : i32
    scf.if %44 {
      %c0_23 = arith.constant 0 : index
      %c0_24 = arith.constant 0 : index
      %45 = vector.load %arg10[%c0_23, %c0_24] : memref<16x1xf32, #tpu.memory_space<vmem>>, vector<16x1xf32>
      %c0_25 = arith.constant 0 : index
      %c0_26 = arith.constant 0 : index
      %46 = vector.load %arg11[%c0_25, %c0_26] : memref<16x1xf32, #tpu.memory_space<vmem>>, vector<16x1xf32>
      %47 = math.log %46 : vector<16x1xf32>
      %48 = arith.addf %45, %47 : vector<16x1xf32>
      %cst_27 = arith.constant 5.000000e-01 : f32
      %49 = vector.broadcast %cst_27 : f32 to vector<16x1xf32>
      %50 = arith.mulf %49, %48 : vector<16x1xf32>
      %c0_28 = arith.constant 0 : index
      %c0_29 = arith.constant 0 : index
      %51 = vector.load %arg12[%c0_28, %c0_29] : memref<16x1xf32, #tpu.memory_space<vmem>>, vector<16x1xf32>
      %52 = arith.addf %50, %51 : vector<16x1xf32>
      %53 = tpu.iota {dimensions = array<i32: 0>} : vector<16x1xi32>
      %c16_i32_30 = arith.constant 16 : i32
      %54 = arith.muli %arg0, %c16_i32_30 : i32
      %55 = vector.broadcast %54 : i32 to vector<16x1xi32>
      %56 = arith.addi %55, %53 : vector<16x1xi32>
      %c8_i32_31 = arith.constant 8 : i32
      %57 = vector.broadcast %c8_i32_31 : i32 to vector<16x1xi32>
      %58 = arith.cmpi slt, %56, %57 : vector<16x1xi32>
      %cst_32 = arith.constant 0.000000e+00 : f32
      %59 = vector.broadcast %cst_32 : f32 to vector<16x1xf32>
      %60 = arith.select %58, %52, %59 : vector<16x1xi1>, vector<16x1xf32>
      %cst_33 = arith.constant 1.250000e-01 : f32
      %61 = vector.broadcast %cst_33 : f32 to vector<16x1xf32>
      %62 = arith.mulf %60, %61 : vector<16x1xf32>
      %63 = vector.shape_cast %62 : vector<16x1xf32> to vector<16x1xf32>
      %64 = vector.broadcast %63 : vector<16x1xf32> to vector<16x128xf32>
      %c0_34 = arith.constant 0 : index
      %c0_35 = arith.constant 0 : index
      %65 = vector.load %arg8[%c0_34, %c0_35] : memref<16x128xf32, #tpu.memory_space<vmem>>, vector<16x128xf32>
      tpu.vector_store %arg8[%c0_34, %c0_35], %64 {strides = array<i32>} : memref<16x128xf32, #tpu.memory_space<vmem>>, vector<16x128xf32>,
    } else {
    }
    return
  }
  func.func @transform_0(%arg0: i32, %arg1: i32) -> (i32, i32) {
    %c0_i32 = arith.constant 0 : i32
    %c0_i32_0 = arith.constant 0 : i32
    return %arg0, %c0_i32 : i32, i32
  }
  func.func @transform_1(%arg0: i32, %arg1: i32) -> (i32, i32) {
    %c0_i32 = arith.constant 0 : i32
    %c0_i32_0 = arith.constant 0 : i32
    return %arg1, %c0_i32 : i32, i32
  }
  func.func @transform_2(%arg0: i32, %arg1: i32) -> (i32, i32) {
    %c0_i32 = arith.constant 0 : i32
    %c0_i32_0 = arith.constant 0 : i32
    return %arg0, %c0_i32 : i32, i32
  }
  func.func @transform_3(%arg0: i32, %arg1: i32) -> (i32, i32) {
    %c0_i32 = arith.constant 0 : i32
    %c0_i32_0 = arith.constant 0 : i32
    %c0_i32_1 = arith.constant 0 : i32
    return %c0_i32, %c0_i32_0 : i32, i32
  }
  func.func @transform_4(%arg0: i32, %arg1: i32) -> (i32, i32) {
    %c0_i32 = arith.constant 0 : i32
    %c0_i32_0 = arith.constant 0 : i32
    %c0_i32_1 = arith.constant 0 : i32
    return %c0_i32, %c0_i32_0 : i32, i32
  }
  func.func @transform_5(%arg0: i32, %arg1: i32) -> (i32, i32) {
    %c0_i32 = arith.constant 0 : i32
    %c0_i32_0 = arith.constant 0 : i32
    %c0_i32_1 = arith.constant 0 : i32
    return %c0_i32, %c0_i32_0 : i32, i32
  }
  func.func @transform_6(%arg0: i32, %arg1: i32) -> (i32, i32) {
    %c0_i32 = arith.constant 0 : i32
    %c0_i32_0 = arith.constant 0 : i32
    return %arg0, %c0_i32 : i32, i32
  }
}

</mosaic_0001>

<bundles_post_ra>
// kernel: _forward.1
= control target key start
LH: loop header
LB: loop body
LE: loop exit
PB: predicated region body
PF: predicated region fallthrough
CT: control target
= control target key end

     0   :  { %v871_v0 = vmov 0.0   ;;  %vm872_vm0 = vmmov 0   ;;  %vm364_vm1 = vcmask 7168   ;;  %vm585_vm3 = vcmask 130048   ;;  %s1089_s3 = inlined_call_operand.vmem [shape: bf16[128,128], index: 3, kind: input, shape index: {}]   ;;  %s1090_s4 = inlined_call_operand.vmem [shape: bf16[128,128], index: 4, kind: input, shape index: {}]   ;;  %s1091_s0 = inlined_call_operand.vmem [shape: bf16[16,128], index: 0, kind: input, shape index: {}]   ;;  %s1092_s2 = inlined_call_operand.vmem [shape: bf16[16,128], index: 2, kind: input, shape index: {}, may-alias: {1,2}]   ;;  %s1093_s1 = inlined_call_operand.vmem [shape: bf16[16,128], index: 1, kind: input, shape index: {}, may-alias: {1,2}]   ;;  %s1094_s5 = inlined_call_operand.vmem [shape: f32[1,128], index: 5, kind: input, shape index: {}]   ;;  %s1095_s6 = inlined_call_operand.vmem [shape: f32[16,128], index: 6, kind: output, shape index: {}]  }
   0x1   :  { %739 = vmatprep.subr.bf16.mxu0 %v871_v0  ;;  %v822_v1 = vld [vmem:[%s1089_s3] sm:$0xff]   ;;  %759 = vmatprep.subr.bf16.mxu1 %v871_v0  ;;  %v823_v2 = vld [vmem:[%s1089_s3 + $0x8] sm:$0xff]   ;;  %v825_v5 = vld [vmem:[%s1089_s3 + $0x10] sm:$0xff]   ;;  %369 = vst.msk [vmem:[#allocation4] sm:$0xff] %vm364_vm1, %v871_v0  ;;  %vm282_vm4 = vcmask 1040384  }
   0x2   :  { %755 = vmatprep.mubr.msk.bf16.mxu0 %vm872_vm0, %v871_v0  ;;  %775 = vmatprep.mubr.msk.bf16.mxu1 %vm872_vm0, %v871_v0  ;;  %v824_v3 = vld [vmem:[%s1090_s4] sm:$0xff]   ;;  %v826_v4 = vld [vmem:[%s1090_s4 + $0x8] sm:$0xff]   ;;  %v828_v6 = vld [vmem:[%s1090_s4 + $0x10] sm:$0xff]   ;;  %370 = vst.msk [vmem:[#allocation4 + $0x8] sm:$0xff] %vm364_vm1, %v871_v0 }
   0x3   :  { %740 = vmatpush3.bf16.msra.mxu0 %v822_v1  ;;  %760 = vmatpush3.bf16.msra.mxu1 %v824_v3  ;;  %v827_v7 = vld [vmem:[%s1089_s3 + $0x18] sm:$0xff]   ;;  %v829_v9 = vld [vmem:[%s1089_s3 + $0x20] sm:$0xff]   ;;  %v831_v11 = vld [vmem:[%s1089_s3 + $0x28] sm:$0xff]  }
   0x4   :  { %741 = vmatprep.subr.bf16.mxu0 %v871_v0  ;;  %761 = vmatprep.subr.bf16.mxu1 %v871_v0  ;;  %v830_v8 = vld [vmem:[%s1090_s4 + $0x18] sm:$0xff]   ;;  %v832_v10 = vld [vmem:[%s1090_s4 + $0x20] sm:$0xff]   ;;  %v834_v12 = vld [vmem:[%s1090_s4 + $0x28] sm:$0xff]  }
   0x5   :  { %v833_v13 = vld [vmem:[%s1089_s3 + $0x30] sm:$0xff]   ;;  %v835_v15 = vld [vmem:[%s1089_s3 + $0x38] sm:$0xff]   ;;  %v837_v17 = vld [vmem:[%s1091_s0] sm:$0xff]  }
   0x6   :  { %v836_v14 = vld [vmem:[%s1090_s4 + $0x30] sm:$0xff]   ;;  %v839_v16 = vld [vmem:[%s1090_s4 + $0x38] sm:$0xff]   ;;  %v838_v18 = vld [vmem:[%s1090_s4] sm:$0xff]  }
   0x7   :  { %742 = vmatpush3.bf16.msra.mxu0 %v823_v2  ;;  %762 = vmatpush3.bf16.msra.mxu1 %v826_v4  ;;  %v841_v19 = vld [vmem:[%s1092_s2] sm:$0xff]   ;;  %v840_v20 = vld [vmem:[%s1090_s4 + $0x8] sm:$0xff]   ;;  %v842_v21 = vld [vmem:[%s1090_s4 + $0x10] sm:$0xff]  }
   0x8   :  { %743 = vmatprep.subr.bf16.mxu0 %v871_v0  ;;  %763 = vmatprep.subr.bf16.mxu1 %v871_v0  ;;  %v843_v22 = vld [vmem:[%s1090_s4 + $0x18] sm:$0xff]   ;;  %v844_v23 = vld [vmem:[%s1090_s4 + $0x20] sm:$0xff]   ;;  %v845_v24 = vld [vmem:[%s1090_s4 + $0x28] sm:$0xff]  }
   0x9   :  { %v846_v25 = vld [vmem:[%s1090_s4 + $0x30] sm:$0xff]   ;;  %v847_v26 = vld [vmem:[%s1090_s4 + $0x38] sm:$0xff]   ;;  %v848_v27 = vld [vmem:[%s1093_s1] sm:$0xff]  }
   0xb   :  { %744 = vmatpush3.bf16.msra.mxu0 %v825_v5  ;;  %764 = vmatpush3.bf16.msra.mxu1 %v828_v6  ;;  %v873_v6 = vmov -1e+30  }
   0xc   :  { %745 = vmatprep.subr.bf16.mxu0 %v871_v0  ;;  %765 = vmatprep.subr.bf16.mxu1 %v871_v0  ;;  %367 = vst.msk [vmem:[#allocation3] sm:$0xff] %vm364_vm1, %v873_v6  ;;  %368 = vst.msk [vmem:[#allocation3 + $0x8] sm:$0xff] %vm364_vm1, %v873_v6 }
   0xf   :  { %746 = vmatpush3.bf16.msra.mxu0 %v827_v7  ;;  %766 = vmatpush3.bf16.msra.mxu1 %v830_v8 }
  0x10   :  { %747 = vmatprep.subr.bf16.mxu0 %v871_v0  ;;  %767 = vmatprep.subr.bf16.mxu1 %v871_v0 }
  0x13   :  { %748 = vmatpush3.bf16.msra.mxu0 %v829_v9  ;;  %768 = vmatpush3.bf16.msra.mxu1 %v832_v10 }
  0x14   :  { %749 = vmatprep.subr.bf16.mxu0 %v871_v0  ;;  %769 = vmatprep.subr.bf16.mxu1 %v871_v0 }
  0x17   :  { %750 = vmatpush3.bf16.msra.mxu0 %v831_v11  ;;  %770 = vmatpush3.bf16.msra.mxu1 %v834_v12 }
  0x18   :  { %751 = vmatprep.subr.bf16.mxu0 %v871_v0  ;;  %771 = vmatprep.subr.bf16.mxu1 %v871_v0 }
  0x1b   :  { %752 = vmatpush3.bf16.msra.mxu0 %v833_v13  ;;  %772 = vmatpush3.bf16.msra.mxu1 %v836_v14  ;;  %v352_v13 = vlaneseq }
  0x1c   :  { %753 = vmatprep.subr.bf16.mxu0 %v871_v0  ;;  %773 = vmatprep.subr.bf16.mxu1 %v871_v0 }
  0x1f   :  { %754 = vmatpush3.bf16.msra.mxu0 %v835_v15  ;;  %774 = vmatpush3.bf16.msra.mxu1 %v839_v16  ;;  %v576_v16 = vand.u32 127, %v352_v13 }
  0x20   :  { %779 = vmatprep.subr.bf16.mxu0 %v871_v0 }
  0x21   :  { %vm580_vm2 = vcmp.lt.s32.totalorder %v576_v16, 8 }
  0x22   :  { %756 = vmatmul.mubr.bf16.vlgmr.msra.gmra.mrb[0].mxu0 %v837_v17  ;;  %776 = vmatmul.mubr.bf16.vlgmr.msra.gmra.mrb[0].mxu1 %v841_v19 }
  0x23   :  { %780 = vmatpush3.bf16.msra.mxu0 %v838_v18  ;;  %795 = vmatprep.mubr.msk.bf16.mxu0 %vm872_vm0, %v871_v0 }
  0x24   :  { %781 = vmatprep.subr.bf16.mxu0 %v871_v0 }
  0x27   :  { %782 = vmatpush3.bf16.msra.mxu0 %v840_v20 }
  0x28   :  { %783 = vmatprep.subr.bf16.mxu0 %v871_v0 }
  0x2b   :  { %784 = vmatpush3.bf16.msra.mxu0 %v842_v21 }
  0x2c   :  { %785 = vmatprep.subr.bf16.mxu0 %v871_v0 }
  0x2f   :  { %786 = vmatpush3.bf16.msra.mxu0 %v843_v22 }
  0x30   :  { %787 = vmatprep.subr.bf16.mxu0 %v871_v0 }
  0x33   :  { %788 = vmatpush3.bf16.msra.mxu0 %v844_v23 }
  0x34   :  { %789 = vmatprep.subr.bf16.mxu0 %v871_v0 }
  0x37   :  { %790 = vmatpush3.bf16.msra.mxu0 %v845_v24 }
  0x38   :  { %791 = vmatprep.subr.bf16.mxu0 %v871_v0 }
  0x3b   :  { %792 = vmatpush3.bf16.msra.mxu0 %v846_v25 }
  0x3c   :  { %793 = vmatprep.subr.bf16.mxu0 %v871_v0 }
  0x3f   :  { %794 = vmatpush3.bf16.msra.mxu0 %v847_v26 }
  0x42   :  { %796 = vmatmul.mubr.bf16.vlgmr.msra.gmra.mrb[4].mxu0 %v848_v27 }
  0xf5   :  { %v134_v28 = vpop.f32.mrb[0].mxu0  ;;  %v247_v32 = vpop.f32.mrb[0].mxu1 }
  0xf6   :  { %v757_v29 = vpop.f32.mrb[1].mxu0  ;;  %v254_v30 = vmul.f32 %v134_v28, %v134_v28  ;;  %v777_v34 = vpop.f32.mrb[1].mxu1  ;;  %v266_v45 = vmul.f32 %v247_v32, %v247_v32 }
  0xf7   :  { %v137_v31 = vpop.f32.mrb[2].mxu0  ;;  %v250_v35 = vpop.f32.mrb[2].mxu1 }
  0xf8   :  { %256 = vadd.xlane.f32.xlu1 %v254_v30  ;;  %v758_v33 = vpop.f32.mrb[3].mxu0  ;;  %v255_v36 = vmul.f32 %v137_v31, %v137_v31  ;;  %v778_v37 = vpop.f32.mrb[3].mxu1  ;;  %v267_v38 = vmul.f32 %v250_v35, %v250_v35  ;;  %v280_v30 = vld [vmem:[%s1094_s5] sm:$0x1] }
  0xfc   :  { %258 = vadd.xlane.f32.xlu1 %v255_v36 }
 0x100   :  { %270 = vadd.xlane.f32.xlu1 %v267_v38 }
 0x115   :  { %v477_v39 = vpop.f32.mrb[4].mxu0 }
 0x116   :  { %v797_v40 = vpop.f32.mrb[5].mxu0  ;;  %v484_v41 = vmul.f32 %v477_v39, %v477_v39 }
 0x117   :  { %v480_v42 = vpop.f32.mrb[6].mxu0 }
 0x118   :  { %486 = vadd.xlane.f32.xlu0 %v484_v41  ;;  %v798_v43 = vpop.f32.mrb[7].mxu0  ;;  %v485_v44 = vmul.f32 %v480_v42, %v480_v42  ;;  %v874_v41 = vmov 0  }
 0x119   :  { %820 = vset.pattern.permute.xlu1 %v874_v41  ;;  %821 = vset.pattern.permute.xlu0 %v874_v41 }
 0x11c   :  { %488 = vadd.xlane.f32.xlu0 %v485_v44 }
 0x120   :  { %268 = vadd.xlane.f32.xlu0 %v266_v45  ;;  %v1051_v45 = vld [vmem:[#allocation3 + $0x8] sm:$0xff] }
 0x185   :  { %v257_v46 = vpop.xlane.xlu1 %256 }
 0x186   :  { %v260_v47 = vmax.f32 %v257_v46, 1e-24 }
 0x188   :  { %849 = vrsqrt.f32 %v260_v47 }
 0x189   :  { %v259_v48 = vpop.xlane.xlu1 %258 }
 0x18a   :  { %v261_v49 = vmax.f32 %v259_v48, 1e-24 }
 0x18c   :  { %851 = vrsqrt.f32 %v261_v49 }
 0x18d   :  { %v271_v7 = vpop.xlane.xlu1 %270 }
 0x18e   :  { %v273_v8 = vmax.f32 %v271_v7, 1e-24 }
 0x192   :  { %v850_v50 = vpop.eup %849 }
 0x193   :  { %v264_v51 = vmul.f32 %v850_v50, %v134_v28 }
 0x195   :  { %803 = vmatprep.mubr.f32.mxu1 %v264_v51 }
 0x196   :  { %v852_v52 = vpop.eup %851 }
 0x197   :  { %v1021_v53 = vmul.f32 %v852_v52, %v137_v31  ;;  %v281_v31 = vmul.f32 %v280_v30, %v280_v30 }
 0x199   :  { %v306_v54 = vadd.f32 %v1021_v53, %v264_v51 }
 0x19b   :  { %v307_v11 = vrot.slane %v306_v54, 4 }
 0x19d   :  { %v308_v14 = vadd.f32 %v307_v11, %v306_v54 }
 0x19f   :  { %v309_v17 = vrot.slane %v308_v14, 2 }
 0x1a1   :  { %v310_v21 = vadd.f32 %v309_v17, %v308_v14 }
 0x1a3   :  { %v311_v27 = vrot.slane %v310_v21, 1 }
 0x1a5   :  { %v487_v55 = vpop.xlane.xlu0 %486  ;;  %v312_v33 = vadd.f32 %v311_v27, %v310_v21 }
 0x1a6   :  { %v490_v56 = vmax.f32 %v487_v55, 1e-24 }
 0x1a7   :  { %v322_v36 = vmul.f32 %v312_v33, %v280_v30 }
 0x1a8   :  { %853 = vrsqrt.f32 %v490_v56 }
 0x1a9   :  { %v489_v57 = vpop.xlane.xlu0 %488  ;;  %v323_v38 = vsel %vm282_vm4, %v322_v36, 0.0 }
 0x1aa   :  { %v491_v58 = vmax.f32 %v489_v57, 1e-24 }
 0x1ac   :  { %855 = vrsqrt.f32 %v491_v58 }
 0x1ad   :  { %v269_v59 = vpop.xlane.xlu0 %268 }
 0x1ae   :  { %v272_v60 = vmax.f32 %v269_v59, 1e-24 }
 0x1b0   :  { %857 = vrsqrt.f32 %v272_v60 }
 0x1b1   :  { %859 = vrsqrt.f32 %v273_v8 }
 0x1b2   :  { %v854_v61 = vpop.eup %853 }
 0x1b3   :  { %v494_v63 = vmul.f32 %v854_v61, %v477_v39 }
 0x1b6   :  { %v856_v62 = vpop.eup %855 }
 0x1b7   :  { %v495_v1 = vmul.f32 %v856_v62, %v480_v42  ;;  %v1046_v42 = vld [vmem:[#allocation3] sm:$0xff] }
 0x1b9   :  { %v806_v2 = vpack.c.bf16 %v495_v1, %v494_v63 }
 0x1ba   :  { %v858_v3 = vpop.eup %857 }
 0x1bb   :  { %v276_v4 = vmul.f32 %v858_v3, %v247_v32  ;;  %807 = vmatprep.subr.bf16.mxu1 %v806_v2  ;;  %v860_v9 = vpop.eup %859 }
 0x1bc   :  { %809 = vmatpush3.bf16.xpose.msra.mxu1 %v806_v2  ;;  %v1031_v10 = vmul.f32 %v860_v9, %v250_v35  ;;  %v283_v35 = vsel %vm282_vm4, %v281_v31, 0.0  ;;  %v353_v9 = vshrl.u32 %v352_v13, 7  ;;  %v594_v31 = vld [vmem:[#allocation4] sm:$0xff] }
 0x1bd   :  { %v293_v5 = vmul.f32 %v276_v4, %v264_v51 }
 0x1be   :  { %v313_v12 = vadd.f32 %v1031_v10, %v276_v4  ;;  %vm357_vm5 = vcmp.eq.s32.totalorder %v353_v9, 0 }
 0x1c0   :  { %v314_v15 = vrot.slane %v313_v12, 4 }
 0x1c2   :  { %v315_v18 = vadd.f32 %v314_v15, %v313_v12 }
 0x1c3   :  { %804 = vmatmul.mubr.f32.vlgmr.msra.gmra.mrb[4].mxu1 %v1021_v53 }
 0x1c4   :  { %v316_v22 = vrot.slane %v315_v18, 2 }
 0x1c6   :  { %v317_v28 = vadd.f32 %v316_v22, %v315_v18 }
 0x1c8   :  { %v318_v34 = vrot.slane %v317_v28, 1 }
 0x1ca   :  { %v319_v37 = vadd.f32 %v318_v34, %v317_v28 }
 0x1cc   :  { %v335_v39 = vmul.f32 %v319_v37, %v280_v30 }
 0x1ce   :  { %v336_v40 = vsel %vm282_vm4, %v335_v39, 0.0 }
 0x296   :  { %v805_v19 = vpop.f32.mrb[4].mxu1 }
 0x297   :  { %v564_v20 = vpop.f32.mrb[5].mxu1  ;;  %v574_v23 = vmul.f32 14.285714, %v805_v19 }
 0x298   :  { %v573_v24 = vmul.f32 14.285714, %v564_v20 }
 0x299   :  { %v1039_v29 = vsel %vm580_vm2, %v574_v23, -1e+30 }
 0x29a   :  { %v1035_v25 = vsel %vm580_vm2, %v573_v24, -1e+30  ;;  %v589_v32 = vsel %vm585_vm3, %v1039_v29, -inf }
 0x29b   :  { %v586_v26 = vsel %vm585_vm3, %v1035_v25, -inf }
 0x29c   :  { %587 = vmax.xlane.f32.xlu0 %v586_v26  ;;  %v294_v26 = vmul.f32 %v1031_v10, %v1021_v53 }
 0x2a0   :  { %590 = vmax.xlane.f32.xlu0 %v589_v32 }
 0x2a4   :  { %284 = vadd.xlane.f32.xlu0 %v283_v35  ;;  %v595_v35 = vld [vmem:[#allocation4 + $0x8] sm:$0xff] }
 0x2a8   :  { %324 = vadd.xlane.f32.xlu0 %v323_v38 }
 0x2ac   :  { %337 = vadd.xlane.f32.xlu0 %v336_v40 }
 0x2b0   :  { %295 = vadd.xlane.f32.xlu0 %v293_v5 }
 0x329   :  { %v588_v43 = vpop.xlane.xlu0 %587 }
 0x32a   :  { %v1049_v44 = vmax.f32 %v1046_v42, %v588_v43 }
 0x32c   :  { %v596_v46 = vsub.f32 %v1046_v42, %v1049_v44  ;;  %631 = vst.msk [vmem:[#allocation3] sm:$0xff] %vm364_vm1, %v1049_v44  ;;  %606 = vperm.xlu1 %820, %v1049_v44  }
 0x32d   :  { %v591_v47 = vpop.xlane.xlu0 %590 }
 0x32e   :  { %v1059_v48 = vmax.f32 %v1051_v45, %v591_v47  ;;  %v598_v28 = vmul.f32 1.442695, %v596_v46 }
 0x330   :  { %v597_v49 = vsub.f32 %v1051_v45, %v1059_v48  ;;  %632 = vst.msk [vmem:[#allocation3 + $0x8] sm:$0xff] %vm364_vm1, %v1059_v48  ;;  %611 = vperm.xlu0 %821, %v1059_v48  }
 0x331   :  { %v285_v50 = vpop.xlane.xlu0 %284 }
 0x332   :  { %v286_v51 = vrot.slane %v285_v50, 4 }
 0x333   :  { %v636_v42 = vld [vmem:[#allocation3] sm:$0xff] }
 0x334   :  { %v287_v52 = vadd.f32 %v286_v51, %v285_v50  ;;  %672 = vperm.xlu0 %821, %v871_v0  }
 0x335   :  { %v325_v54 = vpop.xlane.xlu0 %324 }
 0x336   :  { %v288_v55 = vrot.slane %v287_v52, 2  ;;  %v326_v56 = vrot.slane %v325_v54, 4 }
 0x338   :  { %v327_v57 = vadd.f32 %v326_v56, %v325_v54  ;;  %v289_v58 = vadd.f32 %v288_v55, %v287_v52 }
 0x339   :  { %v338_v59 = vpop.xlane.xlu0 %337 }
 0x33a   :  { %v328_v60 = vrot.slane %v327_v57, 2  ;;  %v339_v61 = vrot.slane %v338_v59, 4  ;;  %v290_v62 = vrot.slane %v289_v58, 1 }
 0x33c   :  { %v340_v63 = vadd.f32 %v339_v61, %v338_v59  ;;  %v291_v1 = vadd.f32 %v290_v62, %v289_v58  ;;  %v329_v2 = vadd.f32 %v328_v60, %v327_v57 }
 0x33d   :  { %v296_v8 = vpop.xlane.xlu0 %295 }
 0x33e   :  { %v341_v3 = vrot.slane %v340_v63, 2  ;;  %810 = vpush %v291_v1  ;;  %v330_v4 = vrot.slane %v329_v2, 1  ;;  %v299_v11 = vmul.f32 14.285714, %v296_v8 }
 0x340   :  { %v331_v5 = vadd.f32 %v330_v4, %v329_v2  ;;  %v342_v6 = vadd.f32 %v341_v3, %v340_v63  ;;  %v355_v12 = vmul.f32 -0.5, %v299_v11 }
 0x342   :  { %812 = vpush %v331_v5  ;;  %v343_v7 = vrot.slane %v342_v6, 1 }
 0x344   :  { %v344_v0 = vadd.f32 %v343_v7, %v342_v6 }
 0x346   :  { %814 = vpush %v344_v0 }
 0x36f   :  { %s811_s5 = spop %810 }
 0x370   :  { %s320_s24 = sadd.f32 1.0, %s811_s5 }
 0x372   :  { %s321_s25 = smul.f32 8.0, %s320_s24 }
 0x373   :  { %s813_s26 = spop %812 }
 0x374   :  { %s333_s27 = smul.f32 2.0, %s813_s26 }
 0x376   :  { %s334_s29 = ssub.f32 %s321_s25, %s333_s27 }
 0x377   :  { %s815_s28 = spop %814 }
 0x378   :  { %s346_s30 = smul.f32 2.0, %s815_s28 }
 0x379   :  { %s348_s8 = smul.f32 0.5, %s334_s29 }
 0x37a   :  { %s347_s7 = ssub.f32 %s321_s25, %s346_s30 }
 0x37c   :  { %s349_s3 = smul.f32 0.5, %s347_s7 }
 0x37e   :  { %s350_s9 = sadd.f32 %s349_s3, %s348_s8 }
 0x380   :  { %s351_s10 = smul.f32 0.5, %s350_s9 }
 0x382   :  { %v359_v14 = vstv %s351_s10 }
 0x383   :  { %v360_v15 = vsel %vm357_vm5, %v359_v14, 0.0 }
 0x384   :  { %v362_v16 = vadd.f32 %v360_v15, %v355_v12 }
 0x386   :  { %365 = vst.msk [vmem:[#allocation5] sm:$0xff] %vm364_vm1, %v362_v16 }
 0x38d   :  { %v648_v45 = vld [vmem:[#allocation5] sm:$0xff] }
 0x3ab   :  { %v607_v17 = vpop.permute.xlu1 %606 }
 0x3ac   :  { %v614_v18 = vsub.f32 %v1035_v25, %v607_v17 }
 0x3ae   :  { %v616_v19 = vmul.f32 1.442695, %v614_v18 }
 0x3af   :  { %v612_v20 = vpop.permute.xlu0 %611 }
 0x3b0   :  { %861 = vpow2.f32 %v616_v19  ;;  %v615_v21 = vsub.f32 %v1039_v29, %v612_v20  ;;  %v600_v29 = vmul.f32 1.442695, %v597_v49 }
 0x3b2   :  { %v618_v13 = vmul.f32 1.442695, %v615_v21 }
 0x3b3   :  { %v673_v22 = vpop.permute.xlu0 %672 }
 0x3b4   :  { %676 = vst [vmem:[%s1095_s6 + $0x8] sm:$0xff] %v673_v22  ;;  %863 = vpow2.f32 %v618_v13 }
 0x3b5   :  { %865 = vpow2.f32 %v598_v28 }
 0x3b6   :  { %867 = vpow2.f32 %v600_v29 }
 0x3ba   :  { %v862_v23 = vpop.eup %861 }
 0x3bb   :  { %v620_v24 = vsel %vm585_vm3, %v862_v23, 0.0 }
 0x3bc   :  { %621 = vadd.xlane.f32.xlu1 %v620_v24 }
 0x3be   :  { %v864_v25 = vpop.eup %863 }
 0x3bf   :  { %v623_v27 = vsel %vm585_vm3, %v864_v25, 0.0  ;;  %v866_v30 = vpop.eup %865 }
 0x3c0   :  { %297 = vadd.xlane.f32.xlu1 %v294_v26  ;;  %v602_v32 = vmul.f32 %v866_v30, %v594_v31  ;;  %v868_v10 = vpop.eup %867 }
 0x3c1   :  { %v603_v36 = vmul.f32 %v868_v10, %v595_v35 }
 0x3c4   :  { %624 = vadd.xlane.f32.xlu1 %v623_v27 }
 0x449   :  { %v622_v33 = vpop.xlane.xlu1 %621 }
 0x44a   :  { %v626_v53 = vadd.f32 %v622_v33, %v602_v32 }
 0x44c   :  { %629 = vst.msk [vmem:[#allocation4] sm:$0xff] %vm364_vm1, %v626_v53 }
 0x44d   :  { %v298_v34 = vpop.xlane.xlu1 %297 }
 0x451   :  { %v625_v37 = vpop.xlane.xlu1 %624 }
 0x452   :  { %v627_v38 = vadd.f32 %v625_v37, %v603_v36 }
 0x453   :  { %v638_v39 = vld [vmem:[#allocation4] sm:$0xff] }
 0x454   :  { %630 = vst.msk [vmem:[#allocation4 + $0x8] sm:$0xff] %vm364_vm1, %v627_v38  ;;  %869 = vlog2.f32 %v638_v39 }
 0x45e   :  { %v870_v40 = vpop.eup %869 }
 0x45f   :  { %v641_v41 = vmul.f32 0.6931472, %v870_v40 }
 0x461   :  { %v644_v43 = vadd.f32 %v641_v41, %v636_v42 }
 0x463   :  { %v646_v44 = vmul.f32 0.5, %v644_v43 }
 0x465   :  { %v650_v46 = vadd.f32 %v648_v45, %v646_v44 }
 0x467   :  { %v663_v47 = vmul.f32 0.125, %v650_v46 }
 0x469   :  { %667 = vperm.xlu1 %820, %v663_v47  }
 0x4e8   :  { %v668_v48 = vpop.permute.xlu1 %667 }
 0x4e9   :  { %675 = vst [vmem:[%s1095_s6] sm:$0xff] %v668_v48 }

</bundles_post_ra>
